<compile_context>
chip_gen: v5e
topology: v5e:2x2
jax: 0.10.0
libtpu: 0.0.40
codegen_flags: <defaults>
</compile_context>

<pallas_src>
import jax
import jax.numpy as jnp
from jax.experimental import pallas as pl
from jax.experimental.pallas import tpu as pltpu


def _se_kernel(x_ref, w1_ref, b1_ref, w2t_ref, b2_ref, o_ref):
    # x_ref block: (1, HW, C) — channels-last, C on the lane axis.
    x = x_ref[0]                                                 # (HW, C), input dtype

    # AdaptiveAvgPool2d(1): mean over the spatial (sublane) axis, accumulated in f32.
    pooled = jnp.mean(x.astype(jnp.float32), axis=0, keepdims=True)       # (1, C)

    # fc1: Conv2d(C, S, 1) on a 1x1 map == dense layer, done on the VPU:
    # (S, C) * (1, C) broadcast (free along sublanes), then a lane reduce.
    w1 = w1_ref[...].astype(jnp.float32)                                  # (S, C)
    h = jnp.sum(w1 * pooled, axis=-1, keepdims=True)                      # (S, 1)
    h = jnp.maximum(h + b1_ref[...].astype(jnp.float32), 0.0)             # ReLU

    # fc2: Conv2d(S, C, 1), weights pre-transposed to (S, C):
    # (S, C) * (S, 1) broadcast, then a sublane reduce -> (1, C).
    w2t = w2t_ref[...].astype(jnp.float32)                                # (S, C)
    s = jnp.sum(w2t * h, axis=0, keepdims=True) + b2_ref[...].astype(jnp.float32)
    scale = jax.nn.sigmoid(s)                                             # (1, C)

    # Rescale in the input dtype; (1, C) scale broadcasts along sublanes.
    o_ref[0] = x * scale.astype(o_ref.dtype)


def squeeze_excitation(x_nchw, w1, b1, w2, b2):
    """x_nchw: (N, C, H, W); w1: (S, C); b1: (S,); w2: (C, S); b2: (C,)."""
    N, C, H, W = x_nchw.shape
    S = w1.shape[0]
    HW = H * W

    # Channels-last: lane-dense stores for typical SE channel counts.
    x = jnp.transpose(x_nchw, (0, 2, 3, 1)).reshape(N, HW, C)
    w2t = w2.T                      # (S, C)
    b1c = b1.reshape(S, 1)
    b2r = b2.reshape(1, C)

    # Explicit VMEM budget: double-buffered input + output slabs + tiny params,
    # clamped under v7x's 64 MiB physical VMEM.
    itemsize = jnp.dtype(x_nchw.dtype).itemsize
    block_bytes = HW * C * itemsize
    needed = 4 * block_bytes + 4 * (2 * S * C + S + C) * 4 + (2 << 20)
    vmem_bytes = int(min(max(needed, 32 << 20), 60 << 20))

    out = pl.pallas_call(
        _se_kernel,
        out_shape=jax.ShapeDtypeStruct((N, HW, C), x_nchw.dtype),
        grid_spec=pltpu.PrefetchScalarGridSpec(
            num_scalar_prefetch=0,
            grid=(N,),
            in_specs=[
                pl.BlockSpec((1, HW, C), lambda n: (n, 0, 0)),
                pl.BlockSpec((S, C), lambda n: (0, 0)),
                pl.BlockSpec((S, 1), lambda n: (0, 0)),
                pl.BlockSpec((S, C), lambda n: (0, 0)),
                pl.BlockSpec((1, C), lambda n: (0, 0)),
            ],
            out_specs=pl.BlockSpec((1, HW, C), lambda n: (n, 0, 0)),
        ),
        compiler_params=pltpu.CompilerParams(
            dimension_semantics=("parallel",),
            vmem_limit_bytes=vmem_bytes),
    )(x, w1, b1c, w2t, b2r)

    return out.reshape(N, H, W, C).transpose(0, 3, 1, 2)


def reference(x, w1, b1, w2, b2):
    pooled = jnp.mean(x, axis=(2, 3))                        # (N, C)
    h = jnp.maximum(pooled @ w1.T + b1, 0.0)                 # (N, S)
    s = jax.nn.sigmoid(h @ w2.T + b2)                        # (N, C)
    return x * s[:, :, None, None]


if __name__ == "__main__":
    key = jax.random.PRNGKey(0)
    N, C, S, H, W = 2, 4, 2, 16, 16

    k1, k2, k3, k4, k5 = jax.random.split(key, 5)
    x = jax.random.normal(k1, (N, C, H, W), dtype=jnp.float32)
    # Deterministic synthetic parameters (shapes match Conv2d 1x1 weights squeezed)
    w1 = jax.random.normal(k2, (S, C), dtype=jnp.float32) * 0.5
    b1 = jax.random.normal(k3, (S,), dtype=jnp.float32) * 0.1
    w2 = jax.random.normal(k4, (C, S), dtype=jnp.float32) * 0.5
    b2 = jax.random.normal(k5, (C,), dtype=jnp.float32) * 0.1

    out = squeeze_excitation(x, w1, b1, w2, b2)
    out = jax.block_until_ready(out)

    ref = reference(x, w1, b1, w2, b2)
    assert out.shape == (N, C, H, W)
    assert jnp.allclose(out, ref, atol=1e-5, rtol=1e-5), "mismatch vs reference"
    print("KERNEL_OK")
</pallas_src>

<mosaic_0001>
module attributes {stable_mosaic.version = 11 : i64} {
  func.func @_se_kernel(%arg0: i32, %arg1: memref<1x256x4xf32, #tpu.memory_space<vmem>>, %arg2: memref<2x4xf32, #tpu.memory_space<vmem>>, %arg3: memref<2x1xf32, #tpu.memory_space<vmem>>, %arg4: memref<2x4xf32, #tpu.memory_space<vmem>>, %arg5: memref<1x4xf32, #tpu.memory_space<vmem>>, %arg6: memref<1x256x4xf32, #tpu.memory_space<vmem>>) attributes {dimension_semantics = [#tpu.dimension_semantics<parallel>], iteration_bounds = array<i64: 2>, scalar_prefetch = 0 : i64, scratch_operands = 0 : i64, tpu.core_type = #tpu.core_type<tc>, window_params = [{transform_indices = @transform_0, window_bounds = array<i64: 1, 256, 4>}, {pipeline_mode = #tpu.pipeline_mode<synchronous>, transform_indices = @transform_1, window_bounds = array<i64: 2, 4>}, {pipeline_mode = #tpu.pipeline_mode<synchronous>, transform_indices = @transform_2, window_bounds = array<i64: 2, 1>}, {pipeline_mode = #tpu.pipeline_mode<synchronous>, transform_indices = @transform_3, window_bounds = array<i64: 2, 4>}, {pipeline_mode = #tpu.pipeline_mode<synchronous>, transform_indices = @transform_4, window_bounds = array<i64: 1, 4>}, {transform_indices = @transform_5, window_bounds = array<i64: 1, 256, 4>}]} {
    %c0 = arith.constant 0 : index
    %c0_0 = arith.constant 0 : index
    %c0_1 = arith.constant 0 : index
    %0 = vector.load %arg1[%c0, %c0_0, %c0_1] : memref<1x256x4xf32, #tpu.memory_space<vmem>>, vector<1x256x4xf32>
    %1 = vector.shape_cast %0 : vector<1x256x4xf32> to vector<256x4xf32>
    %cst = arith.constant dense<0.000000e+00> : vector<4xf32>
    %2 = vector.multi_reduction <add>, %1, %cst [0] : vector<256x4xf32> to vector<4xf32>
    %3 = vector.shape_cast %2 : vector<4xf32> to vector<1x4xf32>
    %cst_2 = arith.constant 2.560000e+02 : f32
    %4 = vector.broadcast %cst_2 : f32 to vector<1x4xf32>
    %5 = arith.divf %3, %4 : vector<1x4xf32>
    %c0_3 = arith.constant 0 : index
    %c0_4 = arith.constant 0 : index
    %6 = vector.load %arg2[%c0_3, %c0_4] : memref<2x4xf32, #tpu.memory_space<vmem>>, vector<2x4xf32>
    %7 = vector.broadcast %5 : vector<1x4xf32> to vector<2x4xf32>
    %8 = arith.mulf %6, %7 : vector<2x4xf32>
    %cst_5 = arith.constant dense<0.000000e+00> : vector<2xf32>
    %9 = vector.multi_reduction <add>, %8, %cst_5 [1] : vector<2x4xf32> to vector<2xf32>
    %10 = vector.shape_cast %9 : vector<2xf32> to vector<2x1xf32>
    %c0_6 = arith.constant 0 : index
    %c0_7 = arith.constant 0 : index
    %11 = vector.load %arg3[%c0_6, %c0_7] : memref<2x1xf32, #tpu.memory_space<vmem>>, vector<2x1xf32>
    %12 = arith.addf %10, %11 : vector<2x1xf32>
    %cst_8 = arith.constant 0.000000e+00 : f32
    %13 = vector.broadcast %cst_8 : f32 to vector<2x1xf32>
    %14 = arith.maximumf %12, %13 : vector<2x1xf32>
    %c0_9 = arith.constant 0 : index
    %c0_10 = arith.constant 0 : index
    %15 = vector.load %arg4[%c0_9, %c0_10] : memref<2x4xf32, #tpu.memory_space<vmem>>, vector<2x4xf32>
    %16 = vector.broadcast %14 : vector<2x1xf32> to vector<2x4xf32>
    %17 = arith.mulf %15, %16 : vector<2x4xf32>
    %cst_11 = arith.constant dense<0.000000e+00> : vector<4xf32>
    %18 = vector.multi_reduction <add>, %17, %cst_11 [0] : vector<2x4xf32> to vector<4xf32>
    %19 = vector.shape_cast %18 : vector<4xf32> to vector<1x4xf32>
    %c0_12 = arith.constant 0 : index
    %c0_13 = arith.constant 0 : index
    %20 = vector.load %arg5[%c0_12, %c0_13] : memref<1x4xf32, #tpu.memory_space<vmem>>, vector<1x4xf32>
    %21 = arith.addf %19, %20 : vector<1x4xf32>
    %22 = arith.negf %21 : vector<1x4xf32>
    %23 = math.exp %22 : vector<1x4xf32>
    %cst_14 = arith.constant 1.000000e+00 : f32
    %24 = vector.broadcast %cst_14 : f32 to vector<1x4xf32>
    %25 = arith.addf %24, %23 : vector<1x4xf32>
    %26 = arith.divf %24, %25 : vector<1x4xf32>
    %27 = vector.broadcast %26 : vector<1x4xf32> to vector<256x4xf32>
    %28 = arith.mulf %1, %27 : vector<256x4xf32>
    %c0_15 = arith.constant 0 : index
    %c0_16 = arith.constant 0 : index
    %c0_17 = arith.constant 0 : index
    %29 = vector.load %arg6[%c0_15, %c0_16, %c0_17] : memref<1x256x4xf32, #tpu.memory_space<vmem>>, vector<1x256x4xf32>
    %30 = vector.shape_cast %29 : vector<1x256x4xf32> to vector<256x4xf32>
    %31 = vector.shape_cast %28 : vector<256x4xf32> to vector<1x256x4xf32>
    tpu.vector_store %arg6[%c0_15, %c0_16, %c0_17], %31 {strides = array<i32>} : memref<1x256x4xf32, #tpu.memory_space<vmem>>, vector<1x256x4xf32>,
    return
  }
  func.func @transform_0(%arg0: i32) -> (i32, i32, i32) {
    %c0_i32 = arith.constant 0 : i32
    %c0_i32_0 = arith.constant 0 : i32
    %c0_i32_1 = arith.constant 0 : i32
    return %arg0, %c0_i32, %c0_i32_0 : i32, i32, i32
  }
  func.func @transform_1(%arg0: i32) -> (i32, i32) {
    %c0_i32 = arith.constant 0 : i32
    %c0_i32_0 = arith.constant 0 : i32
    %c0_i32_1 = arith.constant 0 : i32
    return %c0_i32, %c0_i32_0 : i32, i32
  }
  func.func @transform_2(%arg0: i32) -> (i32, i32) {
    %c0_i32 = arith.constant 0 : i32
    %c0_i32_0 = arith.constant 0 : i32
    %c0_i32_1 = arith.constant 0 : i32
    return %c0_i32, %c0_i32_0 : i32, i32
  }
  func.func @transform_3(%arg0: i32) -> (i32, i32) {
    %c0_i32 = arith.constant 0 : i32
    %c0_i32_0 = arith.constant 0 : i32
    %c0_i32_1 = arith.constant 0 : i32
    return %c0_i32, %c0_i32_0 : i32, i32
  }
  func.func @transform_4(%arg0: i32) -> (i32, i32) {
    %c0_i32 = arith.constant 0 : i32
    %c0_i32_0 = arith.constant 0 : i32
    %c0_i32_1 = arith.constant 0 : i32
    return %c0_i32, %c0_i32_0 : i32, i32
  }
  func.func @transform_5(%arg0: i32) -> (i32, i32, i32) {
    %c0_i32 = arith.constant 0 : i32
    %c0_i32_0 = arith.constant 0 : i32
    %c0_i32_1 = arith.constant 0 : i32
    return %arg0, %c0_i32, %c0_i32_0 : i32, i32, i32
  }
}

</mosaic_0001>

<bundles_post_ra>
// kernel: tpu_custom_call.1
= control target key start
LH: loop header
LB: loop body
LE: loop exit
PB: predicated region body
PF: predicated region fallthrough
CT: control target
= control target key end

     0   :  { %s570_s18 = smov 0   ;;  %s866_s0 = inlined_call_operand.vmem [shape: f32[2,256,4], index: 0, kind: input, shape index: {}]   ;;  %s867_s1 = inlined_call_operand.vmem [shape: f32[2,4], index: 1, kind: input, shape index: {}]   ;;  %s868_s2 = inlined_call_operand.vmem [shape: f32[2,1], index: 2, kind: input, shape index: {}]   ;;  %s869_s3 = inlined_call_operand.vmem [shape: f32[2,4], index: 3, kind: input, shape index: {}]   ;;  %s870_s4 = inlined_call_operand.vmem [shape: f32[1,4], index: 4, kind: input, shape index: {}]   ;;  %s871_s5 = inlined_call_operand.vmem [shape: f32[2,256,4], index: 5, kind: output, shape index: {}]  }
   0x1 LB: > { %s499_s19 = sadd.s32 4294967295, %s536_s18   ;;  %p503_p0 = scmp.ge.s32.totalorder %s536_s18, 1  ;;  %s536_s18 = sphi %s570_s18, %s15_s18  }
   0x2   : > { %p187_p1 = scmp.lt.s32.totalorder %s536_s18, 3 }
   0x4   : > { %p188_p2 = pnand %p503_p0, %p187_p1 }
   0x5   : > { %p215_p3 = scmp.lt.s32.totalorder (!%p188_p2), %s499_s19, 1 }
   0x6   : > { %191 = sbr.rel (%p188_p2) target bundleno = 411 (0x19b), region = 40 }
   0xb   : > { %s873_s19 = smov (!%p215_p3, %s499_s19), 1  ;;  %vm257_vm0 = vcmask 31744   ;;  %vm337_vm2 = vcmask 25600  }
   0xc   : > { %s511_s20 = sshll.u32 %s873_s19, 8 }
   0xd   : > { %s586_s23 = scalar_lea.vmem %s866_s0, %s511_s20  ;;  %s765_s9 = scalar_lea.vmem %s871_s5, %s511_s20 }
   0xe   : > { %v589_v0 = vld [vmem:[%s586_s23] sm:$0xff]  ;;  %v592_v1 = vld [vmem:[%s586_s23 + $0x8] sm:$0xff]  ;;  %v595_v2 = vld [vmem:[%s586_s23 + $0x10] sm:$0xff] }
   0xf   : > { %v598_v3 = vld [vmem:[%s586_s23 + $0x18] sm:$0xff]  ;;  %v258_v4 = vsel %vm257_vm0, %v589_v0, 0.0  ;;  %v259_v5 = vsel %vm257_vm0, %v592_v1, 0.0  ;;  %v261_v6 = vsel %vm257_vm0, %v595_v2, 0.0  ;;  %v607_v7 = vld [vmem:[%s586_s23 + $0x20] sm:$0xff]  ;;  %v612_v10 = vld [vmem:[%s586_s23 + $0x28] sm:$0xff] }
  0x10   : > { %v260_v8 = vadd.f32 %v259_v5, %v258_v4  ;;  %v263_v9 = vsel %vm257_vm0, %v598_v3, 0.0  ;;  %v265_v12 = vsel %vm257_vm0, %v607_v7, 0.0  ;;  %v617_v13 = vld [vmem:[%s586_s23 + $0x30] sm:$0xff]  ;;  %v267_v15 = vsel %vm257_vm0, %v612_v10, 0.0  ;;  %v622_v16 = vld [vmem:[%s586_s23 + $0x38] sm:$0xff]  ;;  %v627_v19 = vld [vmem:[%s586_s23 + $0x40] sm:$0xff] }
  0x11   : > { %v269_v18 = vsel %vm257_vm0, %v617_v13, 0.0  ;;  %v271_v21 = vsel %vm257_vm0, %v622_v16, 0.0  ;;  %v632_v22 = vld [vmem:[%s586_s23 + $0x48] sm:$0xff]  ;;  %v273_v24 = vsel %vm257_vm0, %v627_v19, 0.0  ;;  %v637_v25 = vld [vmem:[%s586_s23 + $0x50] sm:$0xff]  ;;  %v642_v28 = vld [vmem:[%s586_s23 + $0x58] sm:$0xff] }
  0x12   : > { %v262_v11 = vadd.f32 %v261_v6, %v260_v8  ;;  %v275_v27 = vsel %vm257_vm0, %v632_v22, 0.0  ;;  %v277_v30 = vsel %vm257_vm0, %v637_v25, 0.0  ;;  %v647_v31 = vld [vmem:[%s586_s23 + $0x60] sm:$0xff]  ;;  %v279_v33 = vsel %vm257_vm0, %v642_v28, 0.0  ;;  %v652_v34 = vld [vmem:[%s586_s23 + $0x68] sm:$0xff]  ;;  %v657_v37 = vld [vmem:[%s586_s23 + $0x70] sm:$0xff] }
  0x13   : > { %v281_v36 = vsel %vm257_vm0, %v647_v31, 0.0  ;;  %v283_v39 = vsel %vm257_vm0, %v652_v34, 0.0  ;;  %v662_v40 = vld [vmem:[%s586_s23 + $0x78] sm:$0xff]  ;;  %v285_v42 = vsel %vm257_vm0, %v657_v37, 0.0  ;;  %v667_v43 = vld [vmem:[%s586_s23 + $0x80] sm:$0xff]  ;;  %v672_v46 = vld [vmem:[%s586_s23 + $0x88] sm:$0xff] }
  0x14   : > { %v264_v14 = vadd.f32 %v263_v9, %v262_v11  ;;  %v287_v45 = vsel %vm257_vm0, %v662_v40, 0.0  ;;  %v289_v48 = vsel %vm257_vm0, %v667_v43, 0.0  ;;  %v677_v49 = vld [vmem:[%s586_s23 + $0x90] sm:$0xff]  ;;  %v291_v51 = vsel %vm257_vm0, %v672_v46, 0.0  ;;  %v682_v52 = vld [vmem:[%s586_s23 + $0x98] sm:$0xff]  ;;  %v687_v55 = vld [vmem:[%s586_s23 + $0xa0] sm:$0xff] }
  0x15   : > { %v293_v54 = vsel %vm257_vm0, %v677_v49, 0.0  ;;  %v295_v57 = vsel %vm257_vm0, %v682_v52, 0.0  ;;  %v692_v58 = vld [vmem:[%s586_s23 + $0xa8] sm:$0xff]  ;;  %v297_v60 = vsel %vm257_vm0, %v687_v55, 0.0  ;;  %v697_v61 = vld [vmem:[%s586_s23 + $0xb0] sm:$0xff]  ;;  %v702_v4 = vld [vmem:[%s586_s23 + $0xb8] sm:$0xff] }
  0x16   : > { %v266_v17 = vadd.f32 %v265_v12, %v264_v14  ;;  %v299_v63 = vsel %vm257_vm0, %v692_v58, 0.0  ;;  %v301_v6 = vsel %vm257_vm0, %v697_v61, 0.0  ;;  %v707_v8 = vld [vmem:[%s586_s23 + $0xc0] sm:$0xff]  ;;  %v303_v11 = vsel %vm257_vm0, %v702_v4, 0.0  ;;  %v712_v12 = vld [vmem:[%s586_s23 + $0xc8] sm:$0xff] }
  0x18   : > { %v268_v20 = vadd.f32 %v267_v15, %v266_v17  ;;  %v305_v15 = vsel %vm257_vm0, %v707_v8, 0.0  ;;  %v717_v17 = vld [vmem:[%s586_s23 + $0xd0] sm:$0xff] }
  0x1a   : > { %v270_v23 = vadd.f32 %v269_v18, %v268_v20  ;;  %v307_v20 = vsel %vm257_vm0, %v712_v12, 0.0 }
  0x1c   : > { %v272_v26 = vadd.f32 %v271_v21, %v270_v23  ;;  %v722_v21 = vld [vmem:[%s586_s23 + $0xd8] sm:$0xff] }
  0x1e   : > { %v274_v29 = vadd.f32 %v273_v24, %v272_v26  ;;  %v538_v24 = vmov 256.0   ;;  %v309_v26 = vsel %vm257_vm0, %v717_v17, 0.0 }
  0x1f   : > { %524 = vrcp.f32 %v538_v24 }
  0x20   : > { %v276_v32 = vadd.f32 %v275_v27, %v274_v29  ;;  %v727_v27 = vld [vmem:[%s586_s23 + $0xe0] sm:$0xff] }
  0x22   : > { %v278_v35 = vadd.f32 %v277_v30, %v276_v32  ;;  %v311_v30 = vsel %vm257_vm0, %v722_v21, 0.0  ;;  %v732_v32 = vld [vmem:[%s586_s23 + $0xe8] sm:$0xff] }
  0x24   : > { %v280_v38 = vadd.f32 %v279_v33, %v278_v35  ;;  %v313_v35 = vsel %vm257_vm0, %v727_v27, 0.0 }
  0x26   : > { %v282_v41 = vadd.f32 %v281_v36, %v280_v38  ;;  %v525_v36 = vpop.eup %524  ;;  %v737_v38 = vld [vmem:[%s586_s23 + $0xf0] sm:$0xff] }
  0x27   : > { %vm332_vm1 = vweird.f32 %v525_v36 }
  0x28   : > { %v284_v44 = vadd.f32 %v283_v39, %v282_v41  ;;  %v315_v41 = vsel %vm257_vm0, %v732_v32, 0.0 }
  0x2a   : > { %v286_v47 = vadd.f32 %v285_v42, %v284_v44  ;;  %v742_v42 = vld [vmem:[%s586_s23 + $0xf8] sm:$0xff] }
  0x2c   : > { %v288_v50 = vadd.f32 %v287_v45, %v286_v47  ;;  %v317_v45 = vsel %vm257_vm0, %v737_v38, 0.0  ;;  %v328_v47 = vmul.f32 256.0, %v525_v36 }
  0x2e   : > { %v290_v53 = vadd.f32 %v289_v48, %v288_v50  ;;  %v319_v50 = vsel %vm257_vm0, %v742_v42, 0.0 }
  0x30   : > { %v292_v56 = vadd.f32 %v291_v51, %v290_v53  ;;  %v329_v53 = vsub.f32 1.0, %v328_v47 }
  0x32   : > { %v294_v59 = vadd.f32 %v293_v54, %v292_v56 }
  0x34   : > { %v296_v62 = vadd.f32 %v295_v57, %v294_v59  ;;  %v330_v57 = vmul.f32 %v525_v36, %v329_v53 }
  0x36   : > { %v298_v5 = vadd.f32 %v297_v60, %v296_v62  ;;  %v331_v62 = vadd.f32 %v525_v36, %v330_v57 }
  0x38   : > { %v300_v9 = vadd.f32 %v299_v63, %v298_v5 }
  0x3a   : > { %v302_v14 = vadd.f32 %v301_v6, %v300_v9  ;;  %v333_v6 = vsel %vm332_vm1, %v525_v36, %v331_v62 }
  0x3c   : > { %v304_v18 = vadd.f32 %v303_v11, %v302_v14  ;;  %v335_v11 = vld [vmem:[%s867_s1] sm:$0x3] }
  0x3e   : > { %v306_v23 = vadd.f32 %v305_v15, %v304_v18 }
  0x40   : > { %v308_v29 = vadd.f32 %v307_v20, %v306_v23  ;;  %v539_v20 = vmov 0   ;;  %v341_v23 = vld [vmem:[%s868_s2] sm:$0x3] }
  0x41   : > { %523 = vset.pattern.permute.xlu0 %v539_v20 }
  0x42   : > { %v310_v33 = vadd.f32 %v309_v26, %v308_v29 }
  0x44   : > { %v312_v39 = vadd.f32 %v311_v30, %v310_v33  ;;  %v344_v30 = vld [vmem:[%s869_s3] sm:$0x3] }
  0x46   : > { %v314_v44 = vadd.f32 %v313_v35, %v312_v39 }
  0x48   : > { %v316_v48 = vadd.f32 %v315_v41, %v314_v44 }
  0x4a   : > { %v318_v51 = vadd.f32 %v317_v45, %v316_v48  ;;  %v358_v48 = vld [vmem:[%s870_s4] sm:$0x1] }
  0x4c   : > { %v320_v54 = vadd.f32 %v319_v50, %v318_v51 }
  0x4e   : > { %v321_v56 = vrot.slane %v320_v54, 4 }
  0x50   : > { %v322_v59 = vadd.f32 %v321_v56, %v320_v54 }
  0x52   : > { %v323_v60 = vrot.slane %v322_v59, 2 }
  0x54   : > { %v324_v63 = vadd.f32 %v323_v60, %v322_v59 }
  0x56   : > { %v325_v5 = vrot.slane %v324_v63, 1 }
  0x58   : > { %v326_v9 = vadd.f32 %v325_v5, %v324_v63 }
  0x5a   : > { %v334_v14 = vmul.f32 %v333_v6, %v326_v9 }
  0x5c   : > { %v336_v15 = vmul.f32 %v335_v11, %v334_v14 }
  0x5e   : > { %v338_v18 = vsel %vm337_vm2, %v336_v15, 0.0 }
  0x5f   : > { %339 = vadd.xlane.f32.xlu0 %v338_v18 }
  0xd2   : > { %v340_v24 = vpop.xlane.xlu0 %339 }
  0xd3   : > { %v342_v26 = vadd.f32 %v341_v23, %v340_v24 }
  0xd5   : > { %v343_v29 = vmax.f32 %v342_v26, 0.0 }
  0xd7   : > { %347 = vperm.xlu0 %523, %v343_v29  }
 0x149   : > { %v348_v33 = vpop.permute.xlu0 %347 }
 0x14a   : > { %v350_v35 = vmul.f32 %v348_v33, %v344_v30 }
 0x14c   : > { %v351_v36 = vsel %vm337_vm2, %v350_v35, 0.0 }
 0x14d   : > { %v352_v39 = vrot.slane %v351_v36, 4 }
 0x14f   : > { %v353_v41 = vadd.f32 %v352_v39, %v351_v36 }
 0x151   : > { %v354_v44 = vrot.slane %v353_v41, 2 }
 0x153   : > { %v355_v45 = vadd.f32 %v354_v44, %v353_v41 }
 0x155   : > { %v356_v47 = vrot.slane %v355_v45, 1 }
 0x157   : > { %v357_v50 = vadd.f32 %v356_v47, %v355_v45 }
 0x159   : > { %v359_v51 = vadd.f32 %v358_v48, %v357_v50 }
 0x15b   : > { %v508_v53 = vmul.f32 -1.442695, %v359_v51 }
 0x15d   : > { %526 = vpow2.f32 %v508_v53 }
 0x163   : > { %v527_v54 = vpop.eup %526 }
 0x164   : > { %v363_v56 = vadd.f32 1.0, %v527_v54 }
 0x166   : > { %528 = vrcp.f32 %v363_v56  ;;  %v375_v62 = vand.u32 2147483648, %v363_v56  ;;  %v373_v5 = vand.u32 2147483647, %v363_v56  ;;  %vm369_vm4 = vweird.f32 %v363_v56 }
 0x168   : > { %v376_v9 = vor.u32 1.1754944e-38, %v375_v62  ;;  %vm374_vm6 = vcmp.eq.f32.partialorder %v373_v5, 8.507059e+37 }
 0x16c   : > { %v529_v57 = vpop.eup %528 }
 0x16d   : > { %v365_v59 = vmul.f32 %v529_v57, %v363_v56  ;;  %vm370_vm3 = vweird.f32 %v529_v57 }
 0x16e   : > { %vm371_vm5 = vmor %vm369_vm4, %vm370_vm3 }
 0x16f   : > { %v366_v60 = vsub.f32 1.0, %v365_v59 }
 0x171   : > { %v367_v63 = vmul.f32 %v529_v57, %v366_v60 }
 0x173   : > { %v368_v6 = vadd.f32 %v529_v57, %v367_v63 }
 0x175   : > { %v372_v11 = vsel %vm371_vm5, %v529_v57, %v368_v6 }
 0x176   : > { %v377_v14 = vsel %vm374_vm6, %v376_v9, %v372_v11 }
 0x177   : > { %v379_v15 = vperm.slane %v377_v14, 0 }
 0x179   : > { %v380_v18 = vmul.f32 %v379_v15, %v589_v0  ;;  %v381_v20 = vmul.f32 %v379_v15, %v592_v1  ;;  %v382_v23 = vmul.f32 %v379_v15, %v595_v2  ;;  %v383_v24 = vmul.f32 %v379_v15, %v598_v3 }
 0x17a   : > { %v384_v26 = vmul.f32 %v379_v15, %v607_v7  ;;  %v385_v29 = vmul.f32 %v379_v15, %v612_v10  ;;  %v386_v0 = vmul.f32 %v379_v15, %v617_v13  ;;  %v387_v1 = vmul.f32 %v379_v15, %v622_v16 }
 0x17b   : > { %412 = vst.msk [vmem:[%s765_s9] sm:$0xff] %vm257_vm0, %v380_v18  ;;  %v388_v2 = vmul.f32 %v379_v15, %v627_v19  ;;  %v389_v3 = vmul.f32 %v379_v15, %v632_v22  ;;  %v390_v7 = vmul.f32 %v379_v15, %v637_v25  ;;  %v391_v10 = vmul.f32 %v379_v15, %v642_v28 }
 0x17c   : > { %413 = vst.msk [vmem:[%s765_s9 + $0x8] sm:$0xff] %vm257_vm0, %v381_v20  ;;  %v392_v13 = vmul.f32 %v379_v15, %v647_v31  ;;  %v393_v16 = vmul.f32 %v379_v15, %v652_v34  ;;  %v394_v19 = vmul.f32 %v379_v15, %v657_v37  ;;  %v395_v22 = vmul.f32 %v379_v15, %v662_v40 }
 0x17d   : > { %414 = vst.msk [vmem:[%s765_s9 + $0x10] sm:$0xff] %vm257_vm0, %v382_v23  ;;  %v396_v25 = vmul.f32 %v379_v15, %v667_v43  ;;  %v397_v28 = vmul.f32 %v379_v15, %v672_v46  ;;  %v398_v31 = vmul.f32 %v379_v15, %v677_v49  ;;  %v399_v34 = vmul.f32 %v379_v15, %v682_v52 }
 0x17e   : > { %415 = vst.msk [vmem:[%s765_s9 + $0x18] sm:$0xff] %vm257_vm0, %v383_v24  ;;  %v400_v37 = vmul.f32 %v379_v15, %v687_v55  ;;  %v401_v40 = vmul.f32 %v379_v15, %v692_v58  ;;  %v402_v43 = vmul.f32 %v379_v15, %v697_v61  ;;  %v403_v46 = vmul.f32 %v379_v15, %v702_v4 }
 0x17f   : > { %416 = vst.msk [vmem:[%s765_s9 + $0x20] sm:$0xff] %vm257_vm0, %v384_v26  ;;  %v404_v49 = vmul.f32 %v379_v15, %v707_v8  ;;  %v405_v52 = vmul.f32 %v379_v15, %v712_v12  ;;  %v406_v55 = vmul.f32 %v379_v15, %v717_v17  ;;  %v407_v58 = vmul.f32 %v379_v15, %v722_v21 }
 0x180   : > { %417 = vst.msk [vmem:[%s765_s9 + $0x28] sm:$0xff] %vm257_vm0, %v385_v29  ;;  %v408_v61 = vmul.f32 %v379_v15, %v727_v27  ;;  %v409_v4 = vmul.f32 %v379_v15, %v732_v32  ;;  %v410_v8 = vmul.f32 %v379_v15, %v737_v38  ;;  %v411_v12 = vmul.f32 %v379_v15, %v742_v42 }
 0x181   : > { %418 = vst.msk [vmem:[%s765_s9 + $0x30] sm:$0xff] %vm257_vm0, %v386_v0 }
 0x182   : > { %419 = vst.msk [vmem:[%s765_s9 + $0x38] sm:$0xff] %vm257_vm0, %v387_v1 }
 0x183   : > { %420 = vst.msk [vmem:[%s765_s9 + $0x40] sm:$0xff] %vm257_vm0, %v388_v2 }
 0x184   : > { %421 = vst.msk [vmem:[%s765_s9 + $0x48] sm:$0xff] %vm257_vm0, %v389_v3 }
 0x185   : > { %422 = vst.msk [vmem:[%s765_s9 + $0x50] sm:$0xff] %vm257_vm0, %v390_v7 }
 0x186   : > { %423 = vst.msk [vmem:[%s765_s9 + $0x58] sm:$0xff] %vm257_vm0, %v391_v10 }
 0x187   : > { %424 = vst.msk [vmem:[%s765_s9 + $0x60] sm:$0xff] %vm257_vm0, %v392_v13 }
 0x188   : > { %425 = vst.msk [vmem:[%s765_s9 + $0x68] sm:$0xff] %vm257_vm0, %v393_v16 }
 0x189   : > { %426 = vst.msk [vmem:[%s765_s9 + $0x70] sm:$0xff] %vm257_vm0, %v394_v19 }
 0x18a   : > { %427 = vst.msk [vmem:[%s765_s9 + $0x78] sm:$0xff] %vm257_vm0, %v395_v22 }
 0x18b   : > { %428 = vst.msk [vmem:[%s765_s9 + $0x80] sm:$0xff] %vm257_vm0, %v396_v25 }
 0x18c   : > { %429 = vst.msk [vmem:[%s765_s9 + $0x88] sm:$0xff] %vm257_vm0, %v397_v28 }
 0x18d   : > { %430 = vst.msk [vmem:[%s765_s9 + $0x90] sm:$0xff] %vm257_vm0, %v398_v31 }
 0x18e   : > { %431 = vst.msk [vmem:[%s765_s9 + $0x98] sm:$0xff] %vm257_vm0, %v399_v34 }
 0x18f   : > { %432 = vst.msk [vmem:[%s765_s9 + $0xa0] sm:$0xff] %vm257_vm0, %v400_v37 }
 0x190   : > { %433 = vst.msk [vmem:[%s765_s9 + $0xa8] sm:$0xff] %vm257_vm0, %v401_v40 }
 0x191   : > { %434 = vst.msk [vmem:[%s765_s9 + $0xb0] sm:$0xff] %vm257_vm0, %v402_v43 }
 0x192   : > { %435 = vst.msk [vmem:[%s765_s9 + $0xb8] sm:$0xff] %vm257_vm0, %v403_v46 }
 0x193   : > { %436 = vst.msk [vmem:[%s765_s9 + $0xc0] sm:$0xff] %vm257_vm0, %v404_v49 }
 0x194   : > { %437 = vst.msk [vmem:[%s765_s9 + $0xc8] sm:$0xff] %vm257_vm0, %v405_v52 }
 0x195   : > { %438 = vst.msk [vmem:[%s765_s9 + $0xd0] sm:$0xff] %vm257_vm0, %v406_v55 }
 0x196   : > { %439 = vst.msk [vmem:[%s765_s9 + $0xd8] sm:$0xff] %vm257_vm0, %v407_v58 }
 0x197   : > { %440 = vst.msk [vmem:[%s765_s9 + $0xe0] sm:$0xff] %vm257_vm0, %v408_v61 }
 0x198   : > { %441 = vst.msk [vmem:[%s765_s9 + $0xe8] sm:$0xff] %vm257_vm0, %v409_v4 }
 0x199   : > { %442 = vst.msk [vmem:[%s765_s9 + $0xf0] sm:$0xff] %vm257_vm0, %v410_v8 }
 0x19a   : > { %443 = vst.msk [vmem:[%s765_s9 + $0xf8] sm:$0xff] %vm257_vm0, %v411_v12 }
 0x19b PF: > { %s15_s18 = sadd.s32 1, %s536_s18  }
 0x19c   : > { %p12_p4 = scmp.ge.s32.totalorder %s15_s18, 4  }
 0x19e   :  { %14 = sbr.rel (!%p12_p4) target bundleno = 1 (0x1), region = 70 }

</bundles_post_ra>
